<compile_context>
chip_gen: v5e
topology: v5e:2x2
jax: 0.10.0
libtpu: 0.0.40
codegen_flags: <defaults>
</compile_context>

<pallas_src>
import functools
import math

import jax
import jax.numpy as jnp
from jax.experimental import pallas as pl
from jax.experimental.pallas import tpu as pltpu


# ----------------------------- parameter setup (glue, plain JAX) -----------------------------

def generate_logspace_timeperiods(num: int, t_min: float, t_max: float) -> jnp.ndarray:
    if not 0 < t_min < t_max:
        raise ValueError(
            f"Invalid t_min ({t_min}) and t_max ({t_max}). They should follow 0 < t_min < t_max."
        )
    exponents = jnp.linspace(0.0, 1.0, num, dtype=jnp.float32)
    log_t_min = jnp.log(jnp.float32(t_min))
    log_t_max = jnp.log(jnp.float32(t_max))
    # torch.lerp(a, b, w) == a + w * (b - a)
    return jnp.exp(log_t_min + exponents * (log_t_max - log_t_min))


def make_omega_interleaved(head_dim: int, rotate_dim: int, t_min: float, t_max: float) -> jnp.ndarray:
    if rotate_dim % 2 != 0:
        raise ValueError("rotate_dim must be a multiple of 2")
    if not head_dim >= rotate_dim:
        raise ValueError("head_dim must be equal to or larger than rotate_dim")
    periods = generate_logspace_timeperiods(rotate_dim // 2, t_min, t_max)
    omega = jnp.zeros((head_dim // 2,), dtype=jnp.float32)
    omega = omega.at[: rotate_dim // 2].set(2.0 * math.pi / periods)
    # einops repeat '... n -> ... (n r)' with r=2  ==> interleaved duplication along the last dim.
    return jnp.repeat(omega, 2)  # (head_dim,) ; entries [rotate_dim:] are exactly 0.0


# ----------------------------------- Pallas kernel -----------------------------------

def _rotary_kernel(ts_ref, p_ref, sinmask_ref, out_ref, *, k: int):
    # ts_ref:      (TR, k)  k consecutive timestamps per packed output row
    # p_ref:       (k, L)   per-slot lane multipliers (interleaved omega, zero elsewhere), resident
    # sinmask_ref: (1, L)   1.0 on sin lanes, 0.0 on cos lanes, resident
    # out_ref:     (TR, L)  packed output rows, L = k * 2*head_dim (multiple of 128)
    ts = ts_ref[...]                               # (TR, k)
    ang = ts[:, 0:1] * p_ref[0:1, :]               # (TR, L) broadcast outer product on the VPU
    for j in range(1, k):                          # remaining slots: exact zeros outside slot j
        ang = ang + ts[:, j:j + 1] * p_ref[j:j + 1, :]
    cos_a = jnp.cos(ang)                           # EUP; cos(0)=1 on the zero omega tail for free
    sin_a = jnp.sin(ang)                           # EUP; sin(0)=0 on the zero omega tail for free
    out = jnp.where(sinmask_ref[...] >= 0.5, sin_a, cos_a)
    out_ref[...] = out.astype(out_ref.dtype)       # single unmasked, lane-dense store


def rotary_time_embedding(
    timestamps: jnp.ndarray,
    omega_rep: jnp.ndarray,
    *,
    max_tile_bytes: int = 2 * 1024 * 1024,
    out_dtype=jnp.float32,
) -> jnp.ndarray:
    """timestamps: any shape -> rotary_emb: (*timestamps.shape, 2*head_dim)."""
    orig_shape = timestamps.shape
    H = int(omega_rep.shape[0])          # head_dim (length of interleaved omega)
    D = 2 * H                            # output lanes per timestep = [cos(H) | sin(H)]
    k = 128 // math.gcd(D, 128)          # timesteps packed per lane-dense row
    L = k * D                            # packed row width (multiple of 128)

    ts_flat = jnp.ravel(timestamps).astype(jnp.float32)
    T = int(ts_flat.shape[0])
    R = -(-T // k)                       # packed rows
    T_k = R * k
    if T_k != T:                         # only when k does not divide T (tiny pad, sliced off later)
        ts_flat = jnp.pad(ts_flat, (0, T_k - T))
    ts_packed = ts_flat.reshape(R, k)

    # ---- lane constants (built once, VMEM-resident in the kernel) ----
    lane = jnp.arange(L, dtype=jnp.int32)
    om_lane = jnp.concatenate([omega_rep.astype(jnp.float32)] * 2)           # (D,) cos+sin halves
    P = jnp.where((lane // D)[None, :] == jnp.arange(k, dtype=jnp.int32)[:, None],
                  jnp.tile(om_lane, k)[None, :], 0.0).astype(jnp.float32)    # (k, L)
    sinmask = ((lane % D) >= H).astype(jnp.float32)[None, :]                 # (1, L)

    # ---- row tiling: ~max_tile_bytes per output tile, ragged last block via cdiv grid ----
    itemsize = jnp.dtype(out_dtype).itemsize
    cap_rows = max(8, (int(max_tile_bytes) // (L * itemsize)) // 8 * 8)
    if R <= cap_rows:
        TR, G = R, 1                     # single block; full-extent dims are exempt from (8,128) rule
    else:
        TR, G = cap_rows, -(-R // cap_rows)

    kernel = functools.partial(_rotary_kernel, k=k)
    cost = pl.CostEstimate(
        flops=T * D * (k + 1),
        transcendentals=2 * T * D,
        bytes_accessed=T * 4 + T * D * itemsize,
    )

    out_packed = pl.pallas_call(
        kernel,
        out_shape=jax.ShapeDtypeStruct((R, L), out_dtype),
        grid_spec=pltpu.PrefetchScalarGridSpec(
            num_scalar_prefetch=0,
            grid=(G,),
            in_specs=[
                pl.BlockSpec((TR, k), lambda r: (r, 0)),   # packed timestamps tile
                pl.BlockSpec((k, L), lambda r: (0, 0)),    # omega lane table (resident)
                pl.BlockSpec((1, L), lambda r: (0, 0)),    # sin-lane mask (resident)
            ],
            out_specs=pl.BlockSpec((TR, L), lambda r: (r, 0)),
        ),
        compiler_params=pltpu.CompilerParams(dimension_semantics=("parallel",)),
        cost_estimate=cost,
    )(ts_packed, P, sinmask)

    # Packed (R, L) holds exactly the bytes of (T_k, D) in row-major order: metadata-only reshape.
    out = out_packed.reshape(T_k, D)
    if T_k != T:
        out = out[:T]
    return out.reshape(*orig_shape, D)


# ----------------------------------- pure-JAX reference -----------------------------------

def _reference(timestamps: jnp.ndarray, omega_rep: jnp.ndarray) -> jnp.ndarray:
    ang = timestamps[..., None].astype(jnp.float32) * omega_rep.astype(jnp.float32)
    return jnp.concatenate([jnp.cos(ang), jnp.sin(ang)], axis=-1)


# ----------------------------------- demo / check -----------------------------------

if __name__ == "__main__":
    key = jax.random.PRNGKey(0)
    k1, k2, k3 = jax.random.split(key, 3)
    t_min, t_max = 1e-2, 10.0

    # Case 1: module-typical small shapes, head_dim=32 (2*head_dim=64 -> k=2 lane packing).
    head_dim, rotate_dim = 32, 16
    omega_rep = make_omega_interleaved(head_dim, rotate_dim, t_min, t_max)
    ts1 = jax.random.uniform(k1, (2, 8), dtype=jnp.float32, minval=0.0, maxval=5.0)
    out1 = jax.block_until_ready(rotary_time_embedding(ts1, omega_rep))
    ref1 = _reference(ts1, omega_rep)
    assert out1.shape == (2, 8, 2 * head_dim) and out1.dtype == jnp.float32
    assert jnp.allclose(out1, ref1, atol=2e-5, rtol=1e-5)

    # Case 2: odd timestep count + tiny tile cap -> multi-block grid with ragged last block
    #         and the (rare) pad/slice path when k does not divide B*N.
    ts2 = jax.random.uniform(k2, (3, 13), dtype=jnp.float32, minval=0.0, maxval=5.0)
    out2 = jax.block_until_ready(rotary_time_embedding(ts2, omega_rep, max_tile_bytes=4096))
    ref2 = _reference(ts2, omega_rep)
    assert out2.shape == (3, 13, 2 * head_dim)
    assert jnp.allclose(out2, ref2, atol=2e-5, rtol=1e-5)

    # Case 3: head_dim=64 (2*head_dim=128 already lane-dense -> k=1 path).
    head_dim3, rotate_dim3 = 64, 32
    omega3 = make_omega_interleaved(head_dim3, rotate_dim3, t_min, t_max)
    ts3 = jax.random.uniform(k3, (2, 16), dtype=jnp.float32, minval=0.0, maxval=5.0)
    out3 = jax.block_until_ready(rotary_time_embedding(ts3, omega3))
    ref3 = _reference(ts3, omega3)
    assert out3.shape == (2, 16, 2 * head_dim3)
    assert jnp.allclose(out3, ref3, atol=2e-5, rtol=1e-5)

    # TODO(synk): RotaryTimeEmbedding.rotate / invert are separate static helpers (not part of
    # forward) and are not implemented here.
    print("KERNEL_OK")
</pallas_src>

<mosaic_0001>
module attributes {stable_mosaic.version = 11 : i64} {
  func.func @_rotary_kernel(%arg0: i32, %arg1: memref<8x2xf32, #tpu.memory_space<vmem>>, %arg2: memref<2x128xf32, #tpu.memory_space<vmem>>, %arg3: memref<1x128xf32, #tpu.memory_space<vmem>>, %arg4: memref<8x128xf32, #tpu.memory_space<vmem>>) attributes {dimension_semantics = [#tpu.dimension_semantics<parallel>], iteration_bounds = array<i64: 1>, scalar_prefetch = 0 : i64, scratch_operands = 0 : i64, tpu.core_type = #tpu.core_type<tc>, window_params = [{transform_indices = @transform_0, window_bounds = array<i64: 8, 2>}, {pipeline_mode = #tpu.pipeline_mode<synchronous>, transform_indices = @transform_1, window_bounds = array<i64: 2, 128>}, {pipeline_mode = #tpu.pipeline_mode<synchronous>, transform_indices = @transform_2, window_bounds = array<i64: 1, 128>}, {transform_indices = @transform_3, window_bounds = array<i64: 8, 128>}]} {
    %c0 = arith.constant 0 : index
    %c0_0 = arith.constant 0 : index
    %0 = vector.load %arg1[%c0, %c0_0] : memref<8x2xf32, #tpu.memory_space<vmem>>, vector<8x2xf32>
    %1 = vector.extract_strided_slice %0 {offsets = [0, 0], sizes = [8, 1], strides = [1, 1]} : vector<8x2xf32> to vector<8x1xf32>
    %c0_1 = arith.constant 0 : index
    %c0_2 = arith.constant 0 : index
    %2 = vector.load %arg2[%c0_1, %c0_2] : memref<2x128xf32, #tpu.memory_space<vmem>>, vector<1x128xf32>
    %3 = vector.broadcast %1 : vector<8x1xf32> to vector<8x128xf32>
    %4 = vector.broadcast %2 : vector<1x128xf32> to vector<8x128xf32>
    %5 = arith.mulf %3, %4 : vector<8x128xf32>
    %6 = vector.extract_strided_slice %0 {offsets = [0, 1], sizes = [8, 1], strides = [1, 1]} : vector<8x2xf32> to vector<8x1xf32>
    %c1 = arith.constant 1 : index
    %c0_3 = arith.constant 0 : index
    %7 = vector.load %arg2[%c1, %c0_3] : memref<2x128xf32, #tpu.memory_space<vmem>>, vector<1x128xf32>
    %8 = vector.broadcast %6 : vector<8x1xf32> to vector<8x128xf32>
    %9 = vector.broadcast %7 : vector<1x128xf32> to vector<8x128xf32>
    %10 = arith.mulf %8, %9 : vector<8x128xf32>
    %11 = arith.addf %5, %10 : vector<8x128xf32>
    %12 = math.cos %11 : vector<8x128xf32>
    %13 = math.sin %11 : vector<8x128xf32>
    %c0_4 = arith.constant 0 : index
    %c0_5 = arith.constant 0 : index
    %14 = vector.load %arg3[%c0_4, %c0_5] : memref<1x128xf32, #tpu.memory_space<vmem>>, vector<1x128xf32>
    %cst = arith.constant 5.000000e-01 : f32
    %15 = vector.broadcast %cst : f32 to vector<1x128xf32>
    %16 = arith.cmpf oge, %14, %15 : vector<1x128xf32>
    %17 = vector.shape_cast %16 : vector<1x128xi1> to vector<1x128xi1>
    %18 = vector.broadcast %17 : vector<1x128xi1> to vector<8x128xi1>
    %19 = arith.select %18, %13, %12 : vector<8x128xi1>, vector<8x128xf32>
    %c0_6 = arith.constant 0 : index
    %c0_7 = arith.constant 0 : index
    %20 = vector.load %arg4[%c0_6, %c0_7] : memref<8x128xf32, #tpu.memory_space<vmem>>, vector<8x128xf32>
    tpu.vector_store %arg4[%c0_6, %c0_7], %19 {strides = array<i32>} : memref<8x128xf32, #tpu.memory_space<vmem>>, vector<8x128xf32>,
    return
  }
  func.func @transform_0(%arg0: i32) -> (i32, i32) {
    %c0_i32 = arith.constant 0 : i32
    %c0_i32_0 = arith.constant 0 : i32
    return %arg0, %c0_i32 : i32, i32
  }
  func.func @transform_1(%arg0: i32) -> (i32, i32) {
    %c0_i32 = arith.constant 0 : i32
    %c0_i32_0 = arith.constant 0 : i32
    %c0_i32_1 = arith.constant 0 : i32
    return %c0_i32, %c0_i32_0 : i32, i32
  }
  func.func @transform_2(%arg0: i32) -> (i32, i32) {
    %c0_i32 = arith.constant 0 : i32
    %c0_i32_0 = arith.constant 0 : i32
    %c0_i32_1 = arith.constant 0 : i32
    return %c0_i32, %c0_i32_0 : i32, i32
  }
  func.func @transform_3(%arg0: i32) -> (i32, i32) {
    %c0_i32 = arith.constant 0 : i32
    %c0_i32_0 = arith.constant 0 : i32
    return %arg0, %c0_i32 : i32, i32
  }
}

</mosaic_0001>

<bundles_post_ra>
// kernel: tpu_custom_call.1
= control target key start
LH: loop header
LB: loop body
LE: loop exit
PB: predicated region body
PF: predicated region fallthrough
CT: control target
= control target key end

     0   :  { %v409_v1 = vmov 0   ;;  %s522_s0 = inlined_call_operand.vmem [shape: f32[8,2], index: 0, kind: input, shape index: {}]   ;;  %s523_s1 = inlined_call_operand.vmem [shape: f32[2,128], index: 1, kind: input, shape index: {}]   ;;  %s524_s2 = inlined_call_operand.vmem [shape: f32[1,128], index: 2, kind: input, shape index: {}]   ;;  %s525_s3 = inlined_call_operand.hbm [shape: f32[8,128], index: 3, kind: output, shape index: {}]  }
   0x1   :  { %v15_v0 = vld [vmem:[%s522_s0] sm:$0xff]  ;;  %379 = vset.pattern.permute.xlu0 %v409_v1 }
   0x2   :  { %8 = vsyncpa [#allocation3], 0  ;;  %19 = vperm.xlu0 %379, %v15_v0   ;;  %v410_v2 = vmov 1   ;;  %v381_v4 = vld [vmem:[%s523_s1] ss:$0 sm:$0xff]  ;;  %s355_s21 = sshll.u32 %s525_s3, 4  ;;  %s356_s21 = int_to_ptr.hbm [resolvable:$true] %s355_s21 }
   0x3   :  { %v382_v5 = vld [vmem:[%s523_s1 + $0x1] ss:$0 sm:$0xff]  ;;  %v411_v21 = vmov 683565275   ;;  %v412_v23 = vmov 2475754826  }
   0x4   :  { %v413_v26 = vmov 2131351028   ;;  %v414_v29 = vmov 2102212464   ;;  %v415_v32 = vmov 920167782  }
   0x5   :  { %v416_v35 = vmov 1326507024  }
   0xa   :  { %380 = vset.pattern.permute.xlu0 %v410_v2 }
   0xb   :  { %26 = vperm.xlu0 %380, %v15_v0  }
  0x74   :  { %v20_v3 = vpop.permute.xlu0 %19 }
  0x75   :  { %v23_v7 = vmul.f32 %v381_v4, %v20_v3 }
  0x7d   :  { %v27_v6 = vpop.permute.xlu0 %26 }
  0x7e   :  { %v30_v8 = vmul.f32 %v382_v5, %v27_v6 }
  0x80   :  { %v448_v9 = vadd.f32 %v30_v8, %v23_v7 }
  0x82   :  { %v35_v10 = vand.u32 2139095040, %v448_v9  ;;  %v32_v13 = vand.u32 2147483647, %v448_v9  ;;  %vm34_vm12 = vcmp.lt.s32.totalorder %v448_v9, 0 }
  0x84   :  { %v36_v11 = vshrl.u32 %v35_v10, 23  ;;  %v39_v15 = vand.u32 8388607, %v32_v13  ;;  %vm33_vm13 = vcmp.le.f32.partialorder %v32_v13, 0.7853982 }
  0x86   :  { %v364_v12 = vadd.s32 4294967169, %v36_v11  ;;  %v40_v19 = vor.u32 8388608, %v39_v15 }
  0x88   :  { %v42_v14 = vadd.s32 1, %v364_v12  ;;  %v465_v42 = vshll.u32 %v40_v19, 8 }
  0x8a   :  { %vm43_vm0 = vcmp.gt.s32.totalorder %v42_v14, 0  ;;  %v81_v51 = vand.u32 65535, %v465_v42  ;;  %v82_v52 = vshrl.u32 %v465_v42, 16 }
  0x8b   :  { %v44_v16 = vsel %vm43_vm0, %v42_v14, 0 }
  0x8c   :  { %v46_v17 = vand.u32 31, %v44_v16  ;;  %v456_v20 = vshrl.u32 %v44_v16, 5 }
  0x8e   :  { %v454_v18 = vsub.s32 32, %v46_v17  ;;  %v49_v22 = vshll.u32 %v411_v21, %v46_v17  ;;  %v52_v24 = vshll.u32 %v412_v23, %v46_v17  ;;  %v55_v28 = vshll.u32 %v413_v26, %v46_v17 }
  0x8f   :  { %v58_v31 = vshll.u32 %v414_v29, %v46_v17  ;;  %v61_v34 = vshll.u32 %v415_v32, %v46_v17  ;;  %vm64_vm1 = vcmp.lt.s32.totalorder %v456_v20, 1  ;;  %vm67_vm2 = vcmp.lt.s32.totalorder %v456_v20, 4 }
  0x90   :  { %v50_v25 = vshrl.u32 %v412_v23, %v454_v18  ;;  %v53_v27 = vshrl.u32 %v413_v26, %v454_v18  ;;  %v56_v30 = vshrl.u32 %v414_v29, %v454_v18  ;;  %v59_v33 = vshrl.u32 %v415_v32, %v454_v18 }
  0x91   :  { %v62_v36 = vshrl.u32 %v416_v35, %v454_v18  ;;  %vm66_vm3 = vcmp.lt.s32.totalorder %v456_v20, 3  ;;  %vm65_vm4 = vcmp.lt.s32.totalorder %v456_v20, 2  ;;  %v48_v16 = vshrl.u32 %v411_v21, %v454_v18 }
  0x92   :  { %v51_v37 = vor.u32 %v50_v25, %v49_v22  ;;  %v54_v38 = vor.u32 %v53_v27, %v52_v24  ;;  %v57_v39 = vor.u32 %v56_v30, %v55_v28  ;;  %v60_v40 = vor.u32 %v59_v33, %v58_v31 }
  0x93   :  { %v63_v41 = vor.u32 %v62_v36, %v61_v34 }
  0x94   :  { %v72_v43 = vsel %vm64_vm1, %v51_v37, %v54_v38  ;;  %v76_v44 = vsel %vm64_vm1, %v54_v38, %v57_v39  ;;  %v73_v45 = vsel %vm67_vm2, %v60_v40, 920167782  ;;  %v69_v12 = vsel %vm67_vm2, %v57_v39, 2102212464 }
  0x95   :  { %v77_v46 = vsel %vm67_vm2, %v63_v41, 1326507024  ;;  %v74_v47 = vsel %vm66_vm3, %v57_v39, %v73_v45  ;;  %v68_v25 = vsel %vm64_vm1, %v48_v16, %v51_v37  ;;  %v70_v26 = vsel %vm66_vm3, %v54_v38, %v69_v12 }
  0x96   :  { %v78_v48 = vsel %vm66_vm3, %v60_v40, %v77_v46  ;;  %v75_v49 = vsel %vm65_vm4, %v72_v43, %v74_v47  ;;  %v71_v18 = vsel %vm65_vm4, %v68_v25, %v70_v26 }
  0x97   :  { %v79_v50 = vsel %vm65_vm4, %v76_v44, %v78_v48  ;;  %v105_v55 = vand.u32 65535, %v75_v49  ;;  %v106_v56 = vshrl.u32 %v75_v49, 16  ;;  %v125_v34 = vmul.u32 %v465_v42, %v71_v18 }
  0x98   :  { %v83_v53 = vand.u32 65535, %v79_v50  ;;  %v84_v54 = vshrl.u32 %v79_v50, 16 }
  0x99   :  { %v108_v59 = vmul.u32 %v106_v56, %v81_v51  ;;  %v109_v60 = vmul.u32 %v105_v55, %v82_v52  ;;  %v107_v0 = vmul.u32 %v105_v55, %v81_v51  ;;  %v110_v5 = vmul.u32 %v106_v56, %v82_v52 }
  0x9a   :  { %v86_v57 = vmul.u32 %v84_v54, %v81_v51  ;;  %v87_v58 = vmul.u32 %v83_v53, %v82_v52  ;;  %v85_v61 = vmul.u32 %v83_v53, %v81_v51  ;;  %v88_v63 = vmul.u32 %v84_v54, %v82_v52 }
  0x9b   :  { %v111_v2 = vshll.u32 %v108_v59, 16  ;;  %v113_v7 = vshll.u32 %v109_v60, 16  ;;  %v112_v23 = vshrl.u32 %v108_v59, 16  ;;  %v114_v29 = vshrl.u32 %v109_v60, 16 }
  0x9c   :  { %v89_v62 = vshll.u32 %v86_v57, 16  ;;  %v91_v3 = vshll.u32 %v87_v58, 16  ;;  %v90_v17 = vshrl.u32 %v86_v57, 16  ;;  %v92_v27 = vshrl.u32 %v87_v58, 16 }
  0x9d   :  { %vm115_vm6 = vc.u32 %v107_v0, %v111_v2  ;;  %v117_v8 = vadd.s32 %v111_v2, %v107_v0 }
  0x9e   :  { %vm93_vm5 = vc.u32 %v85_v61, %v89_v62  ;;  %v95_v4 = vadd.s32 %v89_v62, %v85_v61  ;;  %v116_v11 = vsel %vm115_vm6, 1, %v409_v1  ;;  %vm175_vm6 = vweird.f32 %v448_v9 }
  0x9f   :  { %v94_v6 = vsel %vm93_vm5, 1, %v409_v1  ;;  %v118_v15 = vadd.s32 %v116_v11, %v110_v5  ;;  %vm119_vm8 = vc.u32 %v117_v8, %v113_v7  ;;  %v121_v32 = vadd.s32 %v117_v8, %v113_v7 }
  0xa0   :  { %v96_v10 = vadd.s32 %v94_v6, %v88_v63  ;;  %vm97_vm7 = vc.u32 %v95_v4, %v91_v3  ;;  %v120_v22 = vsel %vm119_vm8, 1, %v409_v1  ;;  %v341_v4 = vld [vmem:[%s524_s2] sm:$0x1]  ;;  %s417_s2 = smov [#allocation2]  }
  0xa1   :  { %v98_v14 = vsel %vm97_vm7, 1, %v409_v1  ;;  %v122_v24 = vadd.s32 %v120_v22, %v118_v15  ;;  %vm342_vm14 = vcmp.ge.f32.partialorder %v341_v4, 0.5  ;;  %s353_s18 = sshll.u32 %s417_s2, 4  ;;  %s354_s18 = int_to_ptr.vmem [resolvable:$true] %s353_s18 }
  0xa2   :  { %v100_v19 = vadd.s32 %v98_v14, %v96_v10  ;;  %v343_v14 = vsel %vm342_vm14, 1, %v409_v1 }
  0xa3   :  { %v123_v30 = vadd.s32 %v122_v24, %v112_v23  ;;  %v344_v22 = vperm.slane %v343_v14, 0 }
  0xa4   :  { %v101_v28 = vadd.s32 %v100_v19, %v90_v17 }
  0xa5   :  { %v124_v21 = vadd.s32 %v123_v30, %v114_v29  ;;  %vm511_vm5 = vcmp.eq.s32.totalorder %v344_v22, 1 }
  0xa6   :  { %v102_v31 = vadd.s32 %v101_v28, %v92_v27 }
  0xa7   :  { %v128_v33 = vadd.s32 1, %v124_v21 }
  0xa8   :  { %vm127_vm9 = vc.u32 %v102_v31, %v121_v32  ;;  %v126_v20 = vadd.s32 %v121_v32, %v102_v31 }
  0xa9   :  { %v129_v35 = vsel %vm127_vm9, %v128_v33, %v124_v21 }
  0xaa   :  { %v130_v36 = vadd.s32 %v129_v35, %v125_v34 }
  0xac   :  { %v131_v37 = vadd.s32 536870912, %v130_v36 }
  0xae   :  { %v132_v39 = vshrl.u32 %v131_v37, 30 }
  0xb0   :  { %v133_v40 = vshll.u32 %v132_v39, 30  ;;  %v156_v59 = vsub.s32 4, %v132_v39 }
  0xb2   :  { %v134_v38 = vsub.s32 %v130_v36, %v133_v40  ;;  %v157_v0 = vsel %vm34_vm12, %v156_v59, %v132_v39 }
  0xb3   :  { %v159_v5 = vsel %vm33_vm13, 0, %v157_v0 }
  0xb4   :  { %vm135_vm10 = vcmp.lt.s32.totalorder %v134_v38, 0  ;;  %v136_v41 = vsub.s32 0, %v134_v38  ;;  %v330_v10 = vadd.s32 3, %v159_v5  ;;  %v176_v17 = vand.u32 3, %v159_v5 }
  0xb6   :  { %v137_v43 = vsel %vm135_vm10, %v136_v41, %v134_v38  ;;  %v331_v19 = vand.u32 3, %v330_v10  ;;  %vm177_vm15 = vcmp.lt.s32.totalorder %v176_v17, 2  ;;  %vm178_vm0 = vcmp.eq.s32.totalorder %v176_v17, 0 }
  0xb7   :  { %v138_v44 = vclz %v137_v43  ;;  %vm181_vm1 = vcmp.eq.s32.totalorder %v176_v17, 2 }
  0xb8   :  { %vm332_vm2 = vcmp.lt.s32.totalorder %v331_v19, 2  ;;  %vm333_vm3 = vcmp.eq.s32.totalorder %v331_v19, 0  ;;  %vm336_vm4 = vcmp.eq.s32.totalorder %v331_v19, 2 }
  0xb9   :  { %v365_v45 = vadd.s32 4294967294, %v138_v44 }
  0xbb   :  { %vm366_vm11 = vcmp.lt.s32.totalorder %v365_v45, 0 }
  0xbc   :  { %v141_v46 = vsel %vm366_vm11, 0, %v365_v45 }
  0xbd   :  { %v142_v47 = vsub.s32 32, %v141_v46  ;;  %v146_v48 = vsub.s32 4294967266, %v141_v46  ;;  %v143_v49 = vshll.u32 %v134_v38, %v141_v46 }
  0xbf   :  { %v144_v50 = vshrl.u32 %v126_v20, %v142_v47  ;;  %v147_v51 = vadd.s32 127, %v146_v48 }
  0xc1   :  { %v145_v42 = vor.u32 %v144_v50, %v143_v49  ;;  %v148_v52 = vshll.u32 %v147_v51, 23 }
  0xc3   :  { %v149_v53 = vor.u32 4788187, %v148_v52  ;;  %v152_v55 = vcvt.s32.f32 %v145_v42 }
  0xc5   :  { %v150_v54 = vand.u32 2147483647, %v149_v53 }
  0xc7   :  { %v153_v56 = vmul.f32 %v152_v55, %v150_v54 }
  0xc9   :  { %v154_v57 = vxor.u32 2147483648, %v153_v56 }
  0xcb   :  { %v155_v58 = vsel %vm34_vm12, %v154_v57, %v153_v56 }
  0xcc   :  { %v158_v60 = vsel %vm33_vm13, %v448_v9, %v155_v58 }
  0xcd   :  { %v160_v61 = vmul.f32 %v158_v60, %v158_v60 }
  0xcf   :  { %v161_v62 = vmul.f32 -0.001358992, %v160_v61  ;;  %v168_v63 = vmul.f32 -0.00019511016, %v160_v61 }
  0xd1   :  { %v162_v2 = vadd.f32 0.041655596, %v161_v62  ;;  %v169_v3 = vadd.f32 0.008332121, %v168_v63 }
  0xd3   :  { %v163_v6 = vmul.f32 %v162_v2, %v160_v61  ;;  %v170_v7 = vmul.f32 %v169_v3, %v160_v61 }
  0xd5   :  { %v164_v8 = vadd.f32 -0.4999988, %v163_v6  ;;  %v171_v13 = vadd.f32 -0.16666654, %v170_v7 }
  0xd7   :  { %v165_v11 = vmul.f32 %v164_v8, %v160_v61  ;;  %v172_v12 = vmul.f32 %v171_v13, %v160_v61 }
  0xd9   :  { %v166_v15 = vadd.f32 1.0, %v165_v11  ;;  %v173_v16 = vadd.f32 1.0, %v172_v12 }
  0xdb   :  { %v174_v23 = vmul.f32 %v173_v16, %v158_v60  ;;  %v182_v24 = vxor.u32 2147483648, %v166_v15 }
  0xdd   :  { %v179_v25 = vxor.u32 2147483648, %v174_v23  ;;  %v183_v27 = vsel %vm181_vm1, %v182_v24, %v174_v23  ;;  %v338_v29 = vsel %vm336_vm4, %v182_v24, %v174_v23 }
  0xdf   :  { %v180_v1 = vsel %vm178_vm0, %v166_v15, %v179_v25  ;;  %v335_v28 = vsel %vm333_vm3, %v166_v15, %v179_v25 }
  0xe0   :  { %v184_v30 = vsel %vm177_vm15, %v180_v1, %v183_v27  ;;  %v339_v31 = vsel %vm332_vm2, %v335_v28, %v338_v29 }
  0xe1   :  { %v185_v32 = vsel %vm175_vm6, nan, %v184_v30  ;;  %v340_v18 = vsel %vm175_vm6, nan, %v339_v31 }
  0xe2   :  { %v346_v21 = vsel %vm511_vm5, %v340_v18, %v185_v32 }
  0xe3   :  { %347 = vst [vmem:[#allocation2] sm:$0xff] %v346_v21 }
  0xe4   :  { %358 = dma.vmem_to_hbm [thread:$0]  %s354_s18, 128, %s356_s21, [#allocation3]  }
  0xe5   :  { %407 = dma.done.wait [#allocation3], 128  }
  0xe6   :  { %408 = vsyncadd [#allocation3], 4294967168 }
  0xe7   :  { %363 = vsyncpa [#allocation3], 1 }

</bundles_post_ra>
